<compile_context>
chip_gen: v5e
topology: v5e:2x2
jax: 0.10.0
libtpu: 0.0.40
codegen_flags: <defaults>
</compile_context>

<pallas_src>
import jax
import jax.numpy as jnp
from jax.experimental import pallas as pl
from jax.experimental.pallas import tpu as pltpu

HIDDEN = 256


def _head_small_kernel(x_ref, w1_ref, b1_ref, w2_ref, b2_ref, out_ref):
    """Single-step path: whole problem resident in VMEM."""
    pre = jnp.dot(x_ref[...], w1_ref[...],
                  preferred_element_type=jnp.float32) + b1_ref[...]
    h = jnp.maximum(pre, 0.0)                      # ReLU (Dropout = identity in eval)
    # (256 -> 1) projection on VPU (mul) + XLU (lane reduce), not the MXU.
    out_ref[...] = jnp.sum(h * w2_ref[...], axis=-1, keepdims=True) + b2_ref[0, 0]


def _head_ktiled_kernel(x_ref, w1_ref, b1_ref, w2_ref, b2_ref, out_ref, acc_ref):
    """K-tiled path: accumulate the (B, 256) pre-activation across in_dim tiles."""
    k = pl.program_id(0)

    @pl.when(k == 0)
    def _():
        acc_ref[...] = jnp.zeros_like(acc_ref)

    # (B, tile_k) @ (tile_k, 256) — full N=256 width per MXU push, f32 accumulate.
    acc_ref[...] += jnp.dot(x_ref[...], w1_ref[...],
                            preferred_element_type=jnp.float32)

    @pl.when(k == pl.num_programs(0) - 1)
    def _():
        h = jnp.maximum(acc_ref[...] + b1_ref[...], 0.0)   # bias + ReLU (Dropout = identity)
        out_ref[...] = jnp.sum(h * w2_ref[...], axis=-1, keepdims=True) + b2_ref[0, 0]


def baseline_forward(img, params, *, tile_k=8192, small_in_dim=16384):
    """img: (B, C, H, W) float32.  Returns a_pred: (B, 1) float32."""
    B = img.shape[0]
    x = img.reshape(B, -1).astype(jnp.bfloat16)    # flatten; bf16 activations
    in_dim = x.shape[1]

    w1 = params["w1"]                              # (in_dim, 256) bf16 (folded backbone-stub + fc1)
    b1 = params["b1"]                              # (1, 256) f32
    w2 = params["w2"]                              # (1, 256) f32  (prediction weight, stored as a row)
    b2 = params["b2"]                              # (1, 1) f32
    hidden = w1.shape[1]

    flops = 2 * B * in_dim * hidden + 2 * B * hidden
    bytes_accessed = (x.size * 2 + w1.size * 2 + b1.size * 4
                      + w2.size * 4 + 4 + B * 4)
    cost = pl.CostEstimate(flops=flops, transcendentals=0,
                           bytes_accessed=bytes_accessed)

    if in_dim <= small_in_dim:
        # Fast path: one DMA, one 256-wide matmul, one store.  At the demo size the
        # whole weight is ~0.5 MiB, so the default scoped VMEM is plenty.
        return pl.pallas_call(
            _head_small_kernel,
            out_shape=jax.ShapeDtypeStruct((B, 1), jnp.float32),
            in_specs=[
                pl.BlockSpec(memory_space=pltpu.MemorySpace.VMEM),   # x
                pl.BlockSpec(memory_space=pltpu.MemorySpace.VMEM),   # w1
                pl.BlockSpec(memory_space=pltpu.MemorySpace.VMEM),   # b1
                pl.BlockSpec(memory_space=pltpu.MemorySpace.VMEM),   # w2 row
                pl.BlockSpec(memory_space=pltpu.MemorySpace.SMEM),   # b2 scalar
            ],
            out_specs=pl.BlockSpec(memory_space=pltpu.MemorySpace.VMEM),
            compiler_params=pltpu.CompilerParams(vmem_limit_bytes=32 << 20),
            cost_estimate=cost,
        )(x, w1, b1, w2, b2)

    # K-tiled path.  tile_k must be lane-aligned (x block last dim).
    assert tile_k % 128 == 0
    pad = (-in_dim) % tile_k
    if pad:
        # Zero padding of the reduction axis does not change x @ w1.
        x = jnp.pad(x, ((0, 0), (0, pad)))
        w1 = jnp.pad(w1, ((0, pad), (0, 0)))
    grid = ((in_dim + pad) // tile_k,)

    # Streamed, double-buffered footprint per step:
    #   2 * (tile_k*256*2 [w1 bf16] + B*tile_k*2 [x bf16])  ≈ 8 MiB at tile_k=8192.
    # 48 MiB scoped limit is safe on v5e/v6e (128 MiB physical) and v7x (64 MiB physical).
    return pl.pallas_call(
        _head_ktiled_kernel,
        out_shape=jax.ShapeDtypeStruct((B, 1), jnp.float32),
        grid_spec=pltpu.PrefetchScalarGridSpec(
            num_scalar_prefetch=0,
            grid=grid,
            in_specs=[
                pl.BlockSpec((B, tile_k), lambda k: (0, k)),        # x, K tiles
                pl.BlockSpec((tile_k, hidden), lambda k: (k, 0)),   # folded weight, K tiles
                pl.BlockSpec((1, hidden), lambda k: (0, 0)),        # fc1 bias (resident)
                pl.BlockSpec((1, hidden), lambda k: (0, 0)),        # prediction weight row (resident)
                pl.BlockSpec(memory_space=pltpu.MemorySpace.SMEM),  # prediction bias scalar
            ],
            out_specs=pl.BlockSpec((B, 1), lambda k: (0, 0)),       # written once on last step
            scratch_shapes=[pltpu.VMEM((B, hidden), jnp.float32)],  # pre-activation accumulator
        ),
        compiler_params=pltpu.CompilerParams(
            # Grid axis is a reduction into the accumulator -> must stay "arbitrary".
            # TODO(synk): if batch ever grows, add a leading batch grid axis marked
            # "parallel" so v7x can shard across its two TensorCores.
            dimension_semantics=("arbitrary",),
            vmem_limit_bytes=48 << 20,
        ),
        cost_estimate=cost,
    )(x, w1, b1, w2, b2)


def init_params(key, in_dim, num_features=2048, hidden=HIDDEN):
    ks = jax.random.split(key, 5)

    def lin(k, fi, fo):
        return jax.random.normal(k, (fi, fo), jnp.float32) / (float(fi) ** 0.5)

    # TODO(synk): stand-in single linear projection replaces the pretrained
    # inception_v3 torch.hub backbone (no clean Pallas equivalent / no checkpoint).
    bb_w = lin(ks[0], in_dim, num_features)                    # (in_dim, 2048)
    fc1_w = lin(ks[1], num_features, hidden)                   # (2048, 256)
    fc1_b = jax.random.normal(ks[2], (1, hidden), jnp.float32) * 0.01
    pred_w = jax.random.normal(ks[3], (1, hidden), jnp.float32) / (float(hidden) ** 0.5)  # row = W_pred^T
    pred_b = jax.random.normal(ks[4], (1, 1), jnp.float32) * 0.01

    # Fold backbone stub into fc1 (valid only while the backbone is linear);
    # bf16 storage halves HBM->VMEM traffic on the DMA-bound path.
    w_fold = jnp.dot(bb_w, fc1_w).astype(jnp.bfloat16)         # (in_dim, 256)

    return {"w1": w_fold, "b1": fc1_b, "w2": pred_w, "b2": pred_b}


if __name__ == "__main__":
    key = jax.random.PRNGKey(0)
    k_img, k_p = jax.random.split(key, 2)

    B, C, H, W = 2, 4, 16, 16
    img = jax.random.normal(k_img, (B, C, H, W), jnp.float32)
    params = init_params(k_p, C * H * W)

    # Pure-JAX reference (same bf16 operands / f32 accumulation).
    x_ref = img.reshape(B, -1).astype(jnp.bfloat16)
    h_ref = jnp.maximum(
        jnp.dot(x_ref, params["w1"], preferred_element_type=jnp.float32) + params["b1"], 0.0)
    ref = jnp.sum(h_ref * params["w2"], axis=-1, keepdims=True) + params["b2"]

    # 1) Small-problem fast path (single-step, whole problem in VMEM).
    a_pred = baseline_forward(img, params)
    jax.block_until_ready(a_pred)
    assert a_pred.shape == (B, 1) and a_pred.dtype == jnp.float32
    assert jnp.allclose(a_pred, ref, atol=2e-2, rtol=2e-2)

    # 2) K-tiled path, exercised at demo size with a small tile (1024 / 256 = 4 steps).
    a_pred_kt = baseline_forward(img, params, tile_k=256, small_in_dim=0)
    jax.block_until_ready(a_pred_kt)
    assert a_pred_kt.shape == (B, 1) and a_pred_kt.dtype == jnp.float32
    assert jnp.allclose(a_pred_kt, ref, atol=2e-2, rtol=2e-2)

    print("KERNEL_OK")
</pallas_src>

<mosaic_0001>
module attributes {stable_mosaic.version = 11 : i64} {
  func.func @_head_small_kernel(%arg0: memref<2x1024xbf16, #tpu.memory_space<vmem>>, %arg1: memref<1024x256xbf16, #tpu.memory_space<vmem>>, %arg2: memref<1x256xf32, #tpu.memory_space<vmem>>, %arg3: memref<1x256xf32, #tpu.memory_space<vmem>>, %arg4: memref<1x1xf32, #tpu.memory_space<smem>>, %arg5: memref<2x1xf32, #tpu.memory_space<vmem>>) attributes {dimension_semantics = [], scalar_prefetch = 0 : i64, scratch_operands = 0 : i64, tpu.core_type = #tpu.core_type<tc>} {
    %c0 = arith.constant 0 : index
    %c0_0 = arith.constant 0 : index
    %0 = vector.load %arg0[%c0, %c0_0] : memref<2x1024xbf16, #tpu.memory_space<vmem>>, vector<2x1024xbf16>
    %c0_1 = arith.constant 0 : index
    %c0_2 = arith.constant 0 : index
    %1 = vector.load %arg1[%c0_1, %c0_2] : memref<1024x256xbf16, #tpu.memory_space<vmem>>, vector<1024x256xbf16>
    %cst = arith.constant dense<0.000000e+00> : vector<2x256xf32>
    %2 = tpu.matmul %0, %1, %cst {dimension_numbers = #tpu.dot_dimension_numbers<[1], [0], [0], [1], [0, 0, 1, 1], [], []>} : vector<2x1024xbf16>, vector<1024x256xbf16>, vector<2x256xf32> -> vector<2x256xf32>
    %c0_3 = arith.constant 0 : index
    %c0_4 = arith.constant 0 : index
    %3 = vector.load %arg2[%c0_3, %c0_4] : memref<1x256xf32, #tpu.memory_space<vmem>>, vector<1x256xf32>
    %4 = vector.broadcast %3 : vector<1x256xf32> to vector<2x256xf32>
    %5 = arith.addf %2, %4 : vector<2x256xf32>
    %cst_5 = arith.constant 0.000000e+00 : f32
    %6 = vector.broadcast %cst_5 : f32 to vector<2x256xf32>
    %7 = arith.maximumf %5, %6 : vector<2x256xf32>
    %c0_6 = arith.constant 0 : index
    %c0_7 = arith.constant 0 : index
    %8 = vector.load %arg3[%c0_6, %c0_7] : memref<1x256xf32, #tpu.memory_space<vmem>>, vector<1x256xf32>
    %9 = vector.broadcast %8 : vector<1x256xf32> to vector<2x256xf32>
    %10 = arith.mulf %7, %9 : vector<2x256xf32>
    %cst_8 = arith.constant dense<0.000000e+00> : vector<2xf32>
    %11 = vector.multi_reduction <add>, %10, %cst_8 [1] : vector<2x256xf32> to vector<2xf32>
    %12 = vector.shape_cast %11 : vector<2xf32> to vector<2x1xf32>
    %c0_9 = arith.constant 0 : index
    %c0_10 = arith.constant 0 : index
    %13 = memref.load %arg4[%c0_9, %c0_10] : memref<1x1xf32, #tpu.memory_space<smem>>
    %14 = vector.broadcast %13 : f32 to vector<2x1xf32>
    %15 = arith.addf %12, %14 : vector<2x1xf32>
    %c0_11 = arith.constant 0 : index
    %c0_12 = arith.constant 0 : index
    %16 = vector.load %arg5[%c0_11, %c0_12] : memref<2x1xf32, #tpu.memory_space<vmem>>, vector<2x1xf32>
    tpu.vector_store %arg5[%c0_11, %c0_12], %15 {strides = array<i32>} : memref<2x1xf32, #tpu.memory_space<vmem>>, vector<2x1xf32>,
    return
  }
}

</mosaic_0001>

<bundles_post_ra>
// kernel: tpu_custom_call.1
= control target key start
LH: loop header
LB: loop body
LE: loop exit
PB: predicated region body
PF: predicated region fallthrough
CT: control target
= control target key end

     0   :  { %11 = vsyncpa [#allocation4], 0  ;;  %s1859_s0 = inlined_call_operand.hbm [shape: bf16[2,1024], index: 0, kind: input, shape index: {}]   ;;  %s1860_s1 = inlined_call_operand.hbm [shape: bf16[1024,256], index: 1, kind: input, shape index: {}]   ;;  %s1861_s2 = inlined_call_operand.vmem [shape: f32[1,256], index: 2, kind: input, shape index: {}]   ;;  %s1862_s3 = inlined_call_operand.vmem [shape: f32[1,256], index: 3, kind: input, shape index: {}]   ;;  %s1863_s4 = inlined_call_operand.<no memory space> [shape: f32[1,1], index: 4, kind: input, shape index: {}]   ;;  %s1864_s5 = inlined_call_operand.vmem [shape: f32[2,1], index: 5, kind: output, shape index: {}]  }
   0x1   :  { %s18_s20 = sshll.u32 %s1859_s0, 4  ;;  %s19_s20 = int_to_ptr.hbm [resolvable:$true] %s18_s20 }
   0x2   :  { %12 = vsyncpa [#allocation6], 0  ;;  %s1775_s21 = smov [#allocation3]   ;;  %s28_s25 = sshll.u32 %s1860_s1, 4  ;;  %s29_s25 = int_to_ptr.hbm [resolvable:$true] %s28_s25 }
   0x3   :  { %s20_s22 = sshll.u32 %s1775_s21, 4  ;;  %s1776_s26 = smov [#allocation5]   ;;  %s21_s22 = int_to_ptr.vmem [resolvable:$true] %s20_s22 }
   0x4   :  { %23 = dma.hbm_to_vmem [thread:$0]  %s19_s20, 128, %s21_s22, [#allocation4]  }
   0x5   :  { %s30_s27 = sshll.u32 %s1776_s26, 4  ;;  %s1777_s28 = smov 128   ;;  %s31_s27 = int_to_ptr.vmem [resolvable:$true] %s30_s27 }
   0x6   :  { %s1778_s29 = smov 8  }
   0x7   :  { %36 = dma.hbm_to_vmem [thread:$0]  %s29_s25, 16384, %s31_s27, [#allocation6], %s1777_s28, %s1777_s28, %s1778_s29  }
   0x8   :  { %1771 = dma.done.wait [#allocation4], 128  }
   0x9   :  { %1772 = vsyncadd [#allocation4], 4294967168 }
   0xa   :  { %1773 = dma.done.wait [#allocation6], 16384  }
   0xb   :  { %1774 = vsyncadd [#allocation6], 4294950912  ;;  %v1137_v0 = vld [vmem:[#allocation5 + $0x70] sm:$0xf]  ;;  %v1606_v1 = vld [vmem:[#allocation5 + $0x74] sm:$0xf0] }
   0xc   :  { %v1201_v2 = vld [vmem:[#allocation5 + $0xf0] sm:$0xf]  ;;  %v1138_v3 = vor.u32 %v1606_v1, %v1137_v0  ;;  %v1622_v4 = vld [vmem:[#allocation5 + $0xf4] sm:$0xf0]  ;;  %v1129_v11 = vld [vmem:[#allocation5 + $0x60] sm:$0xf] }
   0xd   :  { %v1265_v5 = vld [vmem:[#allocation5 + $0x170] sm:$0xf]  ;;  %v1638_v6 = vld [vmem:[#allocation5 + $0x174] sm:$0xf0]  ;;  %v1202_v7 = vor.u32 %v1622_v4, %v1201_v2  ;;  %v1604_v13 = vld [vmem:[#allocation5 + $0x64] sm:$0xf0] }
   0xe   :  { %v1266_v8 = vor.u32 %v1638_v6, %v1265_v5  ;;  %v1329_v9 = vld [vmem:[#allocation5 + $0x1f0] sm:$0xf]  ;;  %v1654_v10 = vld [vmem:[#allocation5 + $0x1f4] sm:$0xf0]  ;;  %844 = vmatpush.bf16.msra.mxu0 %v1138_v3  ;;  %v1193_v14 = vld [vmem:[#allocation5 + $0xe0] sm:$0xf]  ;;  %v1130_v16 = vor.u32 %v1604_v13, %v1129_v11 }
   0xf   :  { %v1330_v12 = vor.u32 %v1654_v10, %v1329_v9  ;;  %v1620_v15 = vld [vmem:[#allocation5 + $0xe4] sm:$0xf0]  ;;  %857 = vmatpush.bf16.msra.mxu1 %v1202_v7  ;;  %v1257_v18 = vld [vmem:[#allocation5 + $0x160] sm:$0xf]  ;;  %v1121_v23 = vld [vmem:[#allocation5 + $0x50] sm:$0xf] }
  0x10   :  { %870 = vmatpush.bf16.msra.mxu2 %v1266_v8  ;;  %v1194_v17 = vor.u32 %v1620_v15, %v1193_v14  ;;  %v1636_v19 = vld [vmem:[#allocation5 + $0x164] sm:$0xf0]  ;;  %v1321_v20 = vld [vmem:[#allocation5 + $0x1e0] sm:$0xf]  ;;  %v1602_v24 = vld [vmem:[#allocation5 + $0x54] sm:$0xf0] }
  0x11   :  { %883 = vmatpush.bf16.msra.mxu3 %v1330_v12  ;;  %v1258_v21 = vor.u32 %v1636_v19, %v1257_v18  ;;  %v1652_v22 = vld [vmem:[#allocation5 + $0x1e4] sm:$0xf0]  ;;  %v1185_v26 = vld [vmem:[#allocation5 + $0xd0] sm:$0xf]  ;;  %v1618_v27 = vld [vmem:[#allocation5 + $0xd4] sm:$0xf0]  ;;  %v1122_v29 = vor.u32 %v1602_v24, %v1121_v23 }
  0x12   :  { %v1322_v25 = vor.u32 %v1652_v22, %v1321_v20  ;;  %v1249_v28 = vld [vmem:[#allocation5 + $0x150] sm:$0xf]  ;;  %845 = vmatpush.bf16.msra.mxu0 %v1130_v16  ;;  %v1634_v30 = vld [vmem:[#allocation5 + $0x154] sm:$0xf0]  ;;  %v1186_v33 = vor.u32 %v1618_v27, %v1185_v26  ;;  %v1113_v35 = vld [vmem:[#allocation5 + $0x40] sm:$0xf] }
  0x13   :  { %v1313_v31 = vld [vmem:[#allocation5 + $0x1d0] sm:$0xf]  ;;  %v1650_v32 = vld [vmem:[#allocation5 + $0x1d4] sm:$0xf0]  ;;  %858 = vmatpush.bf16.msra.mxu1 %v1194_v17  ;;  %v1250_v34 = vor.u32 %v1634_v30, %v1249_v28  ;;  %v1600_v36 = vld [vmem:[#allocation5 + $0x44] sm:$0xf0] }
  0x14   :  { %871 = vmatpush.bf16.msra.mxu2 %v1258_v21  ;;  %v1177_v37 = vld [vmem:[#allocation5 + $0xc0] sm:$0xf]  ;;  %v1314_v38 = vor.u32 %v1650_v32, %v1313_v31  ;;  %v1616_v39 = vld [vmem:[#allocation5 + $0xc4] sm:$0xf0]  ;;  %v1114_v44 = vor.u32 %v1600_v36, %v1113_v35  ;;  %v1105_v47 = vld [vmem:[#allocation5 + $0x30] sm:$0xf] }
  0x15   :  { %884 = vmatpush.bf16.msra.mxu3 %v1322_v25  ;;  %v1241_v40 = vld [vmem:[#allocation5 + $0x140] sm:$0xf]  ;;  %v1632_v41 = vld [vmem:[#allocation5 + $0x144] sm:$0xf0]  ;;  %v1178_v45 = vor.u32 %v1616_v39, %v1177_v37  ;;  %v1598_v48 = vld [vmem:[#allocation5 + $0x34] sm:$0xf0] }
  0x16   :  { %v1305_v42 = vld [vmem:[#allocation5 + $0x1c0] sm:$0xf]  ;;  %v1648_v43 = vld [vmem:[#allocation5 + $0x1c4] sm:$0xf0]  ;;  %846 = vmatpush.bf16.msra.mxu0 %v1122_v29  ;;  %v1242_v46 = vor.u32 %v1632_v41, %v1241_v40  ;;  %v1169_v49 = vld [vmem:[#allocation5 + $0xb0] sm:$0xf]  ;;  %v1106_v56 = vor.u32 %v1598_v48, %v1105_v47 }
  0x17   :  { %859 = vmatpush.bf16.msra.mxu1 %v1186_v33  ;;  %v1306_v50 = vor.u32 %v1648_v43, %v1305_v42  ;;  %v1614_v51 = vld [vmem:[#allocation5 + $0xb4] sm:$0xf0]  ;;  %v1233_v52 = vld [vmem:[#allocation5 + $0x130] sm:$0xf]  ;;  %v1097_v59 = vld [vmem:[#allocation5 + $0x20] sm:$0xf] }
  0x18   :  { %872 = vmatpush.bf16.msra.mxu2 %v1250_v34  ;;  %v1630_v53 = vld [vmem:[#allocation5 + $0x134] sm:$0xf0]  ;;  %v1297_v54 = vld [vmem:[#allocation5 + $0x1b0] sm:$0xf]  ;;  %v1170_v57 = vor.u32 %v1614_v51, %v1169_v49  ;;  %v1596_v60 = vld [vmem:[#allocation5 + $0x24] sm:$0xf0] }
  0x19   :  { %885 = vmatpush.bf16.msra.mxu3 %v1314_v38  ;;  %v1646_v55 = vld [vmem:[#allocation5 + $0x1b4] sm:$0xf0]  ;;  %v1234_v58 = vor.u32 %v1630_v53, %v1233_v52  ;;  %v1161_v61 = vld [vmem:[#allocation5 + $0xa0] sm:$0xf]  ;;  %v1612_v63 = vld [vmem:[#allocation5 + $0xa4] sm:$0xf0]  ;;  %v1098_v4 = vor.u32 %v1596_v60, %v1097_v59 }
  0x1a   :  { %847 = vmatpush.bf16.msra.mxu0 %v1114_v44  ;;  %v1298_v62 = vor.u32 %v1646_v55, %v1297_v54  ;;  %v1225_v0 = vld [vmem:[#allocation5 + $0x120] sm:$0xf]  ;;  %v1628_v1 = vld [vmem:[#allocation5 + $0x124] sm:$0xf0]  ;;  %v1162_v5 = vor.u32 %v1612_v63, %v1161_v61  ;;  %v1089_v7 = vld [vmem:[#allocation5 + $0x10] sm:$0xf] }
  0x1b   :  { %860 = vmatpush.bf16.msra.mxu1 %v1178_v45  ;;  %v1289_v2 = vld [vmem:[#allocation5 + $0x1a0] sm:$0xf]  ;;  %v1644_v3 = vld [vmem:[#allocation5 + $0x1a4] sm:$0xf0]  ;;  %v1226_v6 = vor.u32 %v1628_v1, %v1225_v0  ;;  %v1594_v8 = vld [vmem:[#allocation5 + $0x14] sm:$0xf0] }
  0x1c   :  { %873 = vmatpush.bf16.msra.mxu2 %v1242_v46  ;;  %v1153_v9 = vld [vmem:[#allocation5 + $0x90] sm:$0xf]  ;;  %v1290_v10 = vor.u32 %v1644_v3, %v1289_v2  ;;  %v1610_v11 = vld [vmem:[#allocation5 + $0x94] sm:$0xf0]  ;;  %v1090_v16 = vor.u32 %v1594_v8, %v1089_v7  ;;  %v1081_v17 = vld [vmem:[#allocation5] sm:$0xf] }
  0x1d   :  { %886 = vmatpush.bf16.msra.mxu3 %v1306_v50  ;;  %v1217_v12 = vld [vmem:[#allocation5 + $0x110] sm:$0xf]  ;;  %v1626_v13 = vld [vmem:[#allocation5 + $0x114] sm:$0xf0]  ;;  %v1592_v18 = vld [vmem:[#allocation5 + $0x4] sm:$0xf0]  ;;  %v1154_v19 = vor.u32 %v1610_v11, %v1153_v9 }
  0x1e   :  { %848 = vmatpush.bf16.msra.mxu0 %v1106_v56  ;;  %v1281_v14 = vld [vmem:[#allocation5 + $0x190] sm:$0xf]  ;;  %v1642_v15 = vld [vmem:[#allocation5 + $0x194] sm:$0xf0]  ;;  %v1218_v20 = vor.u32 %v1626_v13, %v1217_v12  ;;  %v1145_v21 = vld [vmem:[#allocation5 + $0x80] sm:$0xf]  ;;  %v1082_v31 = vor.u32 %v1592_v18, %v1081_v17 }
  0x1f   :  { %861 = vmatpush.bf16.msra.mxu1 %v1170_v57  ;;  %v1608_v22 = vld [vmem:[#allocation5 + $0x84] sm:$0xf0]  ;;  %v1209_v23 = vld [vmem:[#allocation5 + $0x100] sm:$0xf]  ;;  %v1282_v24 = vor.u32 %v1642_v15, %v1281_v14  ;;  %v1393_v28 = vld [vmem:[#allocation5 + $0x270] sm:$0xf] }
  0x20   :  { %874 = vmatpush.bf16.msra.mxu2 %v1234_v58  ;;  %v1624_v25 = vld [vmem:[#allocation5 + $0x104] sm:$0xf0]  ;;  %v1273_v26 = vld [vmem:[#allocation5 + $0x180] sm:$0xf]  ;;  %v1670_v29 = vld [vmem:[#allocation5 + $0x274] sm:$0xf0]  ;;  %v1146_v35 = vor.u32 %v1608_v22, %v1145_v21 }
  0x21   :  { %887 = vmatpush.bf16.msra.mxu3 %v1298_v62  ;;  %v1640_v27 = vld [vmem:[#allocation5 + $0x184] sm:$0xf0]  ;;  %v1457_v30 = vld [vmem:[#allocation5 + $0x2f0] sm:$0xf]  ;;  %v1686_v32 = vld [vmem:[#allocation5 + $0x2f4] sm:$0xf0]  ;;  %v1210_v36 = vor.u32 %v1624_v25, %v1209_v23  ;;  %v1394_v40 = vor.u32 %v1670_v29, %v1393_v28 }
  0x22   :  { %849 = vmatpush.bf16.msra.mxu0 %v1098_v4  ;;  %v1521_v33 = vld [vmem:[#allocation5 + $0x370] sm:$0xf]  ;;  %v1702_v34 = vld [vmem:[#allocation5 + $0x374] sm:$0xf0]  ;;  %v1274_v39 = vor.u32 %v1640_v27, %v1273_v26  ;;  %v1458_v41 = vor.u32 %v1686_v32, %v1457_v30  ;;  %v1385_v43 = vld [vmem:[#allocation5 + $0x260] sm:$0xf] }
  0x23   :  { %862 = vmatpush.bf16.msra.mxu1 %v1162_v5  ;;  %v1585_v37 = vld [vmem:[#allocation5 + $0x3f0] sm:$0xf]  ;;  %v1718_v38 = vld [vmem:[#allocation5 + $0x3f4] sm:$0xf0]  ;;  %v1522_v42 = vor.u32 %v1702_v34, %v1521_v33  ;;  %v1668_v44 = vld [vmem:[#allocation5 + $0x264] sm:$0xf0] }
  0x24   :  { %875 = vmatpush.bf16.msra.mxu2 %v1226_v6  ;;  %v1449_v45 = vld [vmem:[#allocation5 + $0x2e0] sm:$0xf]  ;;  %v1586_v46 = vor.u32 %v1718_v38, %v1585_v37  ;;  %v1684_v47 = vld [vmem:[#allocation5 + $0x2e4] sm:$0xf0]  ;;  %v1386_v52 = vor.u32 %v1668_v44, %v1385_v43  ;;  %v1377_v55 = vld [vmem:[#allocation5 + $0x250] sm:$0xf] }
  0x25   :  { %888 = vmatpush.bf16.msra.mxu3 %v1290_v10  ;;  %v1513_v48 = vld [vmem:[#allocation5 + $0x360] sm:$0xf]  ;;  %v1700_v49 = vld [vmem:[#allocation5 + $0x364] sm:$0xf0]  ;;  %v1450_v53 = vor.u32 %v1684_v47, %v1449_v45  ;;  %v1666_v56 = vld [vmem:[#allocation5 + $0x254] sm:$0xf0] }
  0x26   :  { %850 = vmatpush.bf16.msra.mxu0 %v1090_v16  ;;  %v1577_v50 = vld [vmem:[#allocation5 + $0x3e0] sm:$0xf]  ;;  %v1716_v51 = vld [vmem:[#allocation5 + $0x3e4] sm:$0xf0]  ;;  %v1514_v54 = vor.u32 %v1700_v49, %v1513_v48  ;;  %v1441_v57 = vld [vmem:[#allocation5 + $0x2d0] sm:$0xf]  ;;  %v1378_v0 = vor.u32 %v1666_v56, %v1377_v55 }
  0x27   :  { %863 = vmatpush.bf16.msra.mxu1 %v1154_v19  ;;  %v1578_v58 = vor.u32 %v1716_v51, %v1577_v50  ;;  %v1682_v59 = vld [vmem:[#allocation5 + $0x2d4] sm:$0xf0]  ;;  %v1505_v60 = vld [vmem:[#allocation5 + $0x350] sm:$0xf]  ;;  %v1369_v1 = vld [vmem:[#allocation5 + $0x240] sm:$0xf] }
  0x28   :  { %876 = vmatpush.bf16.msra.mxu2 %v1218_v20  ;;  %v1698_v61 = vld [vmem:[#allocation5 + $0x354] sm:$0xf0]  ;;  %v1569_v62 = vld [vmem:[#allocation5 + $0x3d0] sm:$0xf]  ;;  %v1442_v3 = vor.u32 %v1682_v59, %v1441_v57  ;;  %v1664_v5 = vld [vmem:[#allocation5 + $0x244] sm:$0xf0] }
  0x29   :  { %889 = vmatpush.bf16.msra.mxu3 %v1282_v24  ;;  %v1714_v63 = vld [vmem:[#allocation5 + $0x3d4] sm:$0xf0]  ;;  %v1506_v4 = vor.u32 %v1698_v61, %v1505_v60  ;;  %v1433_v6 = vld [vmem:[#allocation5 + $0x2c0] sm:$0xf]  ;;  %v1680_v8 = vld [vmem:[#allocation5 + $0x2c4] sm:$0xf0]  ;;  %v1370_v13 = vor.u32 %v1664_v5, %v1369_v1 }
  0x2a   :  { %851 = vmatpush.bf16.msra.mxu0 %v1082_v31  ;;  %v51_v2 = vld [vmem:[#allocation3] sm:$0xff]  ;;  %v1570_v7 = vor.u32 %v1714_v63, %v1569_v62  ;;  %v1497_v9 = vld [vmem:[#allocation5 + $0x340] sm:$0xf]  ;;  %v1696_v10 = vld [vmem:[#allocation5 + $0x344] sm:$0xf0]  ;;  %v1434_v14 = vor.u32 %v1680_v8, %v1433_v6  ;;  %vm1062_vm0 = vcmask 1041408  }
  0x2b   :  { %864 = vmatpush.bf16.msra.mxu1 %v1146_v35  ;;  %187 = vst [vmem:[#allocation1] ss:$9 sm:$0xff] %v51_v2  ;;  %v1561_v11 = vld [vmem:[#allocation5 + $0x3c0] sm:$0xf]  ;;  %v1712_v12 = vld [vmem:[#allocation5 + $0x3c4] sm:$0xf0]  ;;  %v1498_v15 = vor.u32 %v1696_v10, %v1497_v9 }
  0x2c   :  { %877 = vmatpush.bf16.msra.mxu2 %v1210_v36  ;;  %v1361_v16 = vld [vmem:[#allocation5 + $0x230] sm:$0xf]  ;;  %v1662_v17 = vld [vmem:[#allocation5 + $0x234] sm:$0xf0]  ;;  %v1562_v19 = vor.u32 %v1712_v12, %v1561_v11  ;;  %v1353_v25 = vld [vmem:[#allocation5 + $0x220] sm:$0xf] }
  0x2d   :  { %890 = vmatpush.bf16.msra.mxu3 %v1274_v39  ;;  %v1425_v18 = vld [vmem:[#allocation5 + $0x2b0] sm:$0xf]  ;;  %v1678_v20 = vld [vmem:[#allocation5 + $0x2b4] sm:$0xf0]  ;;  %v1362_v26 = vor.u32 %v1662_v17, %v1361_v16  ;;  %v1660_v32 = vld [vmem:[#allocation5 + $0x224] sm:$0xf0] }
  0x2e   :  { %896 = vmatpush.bf16.msrb.mxu0 %v1394_v40  ;;  %v1489_v21 = vld [vmem:[#allocation5 + $0x330] sm:$0xf]  ;;  %v1694_v22 = vld [vmem:[#allocation5 + $0x334] sm:$0xf0]  ;;  %v1426_v30 = vor.u32 %v1678_v20, %v1425_v18  ;;  %v1417_v33 = vld [vmem:[#allocation5 + $0x2a0] sm:$0xf] }
  0x2f   :  { %909 = vmatpush.bf16.msrb.mxu1 %v1458_v41  ;;  %v1553_v23 = vld [vmem:[#allocation5 + $0x3b0] sm:$0xf]  ;;  %v1710_v24 = vld [vmem:[#allocation5 + $0x3b4] sm:$0xf0]  ;;  %v1490_v31 = vor.u32 %v1694_v22, %v1489_v21  ;;  %v1676_v36 = vld [vmem:[#allocation5 + $0x2a4] sm:$0xf0]  ;;  %v1354_v41 = vor.u32 %v1660_v32, %v1353_v25 }
  0x30   :  { %922 = vmatpush.bf16.msrb.mxu2 %v1522_v42  ;;  %v1554_v35 = vor.u32 %v1710_v24, %v1553_v23  ;;  %v1481_v37 = vld [vmem:[#allocation5 + $0x320] sm:$0xf]  ;;  %v1692_v38 = vld [vmem:[#allocation5 + $0x324] sm:$0xf0]  ;;  %v1418_v42 = vor.u32 %v1676_v36, %v1417_v33  ;;  %v1345_v44 = vld [vmem:[#allocation5 + $0x210] sm:$0xf] }
  0x31   :  { %935 = vmatpush.bf16.msrb.mxu3 %v1586_v46  ;;  %v1545_v39 = vld [vmem:[#allocation5 + $0x3a0] sm:$0xf]  ;;  %v1708_v40 = vld [vmem:[#allocation5 + $0x3a4] sm:$0xf0]  ;;  %v1482_v43 = vor.u32 %v1692_v38, %v1481_v37  ;;  %v1658_v45 = vld [vmem:[#allocation5 + $0x214] sm:$0xf0] }
  0x32   :  { %897 = vmatpush.bf16.msrb.mxu0 %v1386_v52  ;;  %v1815_v27 = vld [vmem:[#allocation1 + $0x12] sm:$0xff]  ;;  %v1817_v28 = vld [vmem:[#allocation1] sm:$0xff]  ;;  %v1821_v34 = vld [vmem:[#allocation1 + $0x9] sm:$0xff]  ;;  %v1546_v47 = vor.u32 %v1708_v40, %v1545_v39  ;;  %vm1071_vm1 = vcmask 1024  }
  0x33   :  { %910 = vmatpush.bf16.msrb.mxu1 %v1450_v53  ;;  %v1819_v29 = vld [vmem:[#allocation1 + $0x1b] sm:$0xff]  ;;  %878 = vmatmul.bf16.vlgmr.msra.gmra.mxu2 %v1815_v27  ;;  %v1674_v48 = vld [vmem:[#allocation5 + $0x294] sm:$0xf0]  ;;  %v1346_v53 = vor.u32 %v1658_v45, %v1345_v44  ;;  %v1465_v60 = vld [vmem:[#allocation5 + $0x300] sm:$0xf] }
  0x34   :  { %923 = vmatpush.bf16.msrb.mxu2 %v1514_v54  ;;  %852 = vmatmul.bf16.vlgmr.msra.gmra.mxu0 %v1817_v28  ;;  %v1409_v46 = vld [vmem:[#allocation5 + $0x290] sm:$0xf]  ;;  %v1690_v50 = vld [vmem:[#allocation5 + $0x314] sm:$0xf0]  ;;  %v1337_v54 = vld [vmem:[#allocation5 + $0x200] sm:$0xf] }
  0x35   :  { %936 = vmatpush.bf16.msrb.mxu3 %v1578_v58  ;;  %865 = vmatmul.bf16.vlgmr.msra.gmra.mxu1 %v1821_v34  ;;  %v1473_v49 = vld [vmem:[#allocation5 + $0x310] sm:$0xf]  ;;  %v1706_v52 = vld [vmem:[#allocation5 + $0x394] sm:$0xf0]  ;;  %v1656_v55 = vld [vmem:[#allocation5 + $0x204] sm:$0xf0]  ;;  %v1410_v56 = vor.u32 %v1674_v48, %v1409_v46 }
  0x36   :  { %898 = vmatpush.bf16.msrb.mxu0 %v1378_v0  ;;  %891 = vmatmul.bf16.vlgmr.msra.gmra.mxu3 %v1819_v29  ;;  %v1537_v51 = vld [vmem:[#allocation5 + $0x390] sm:$0xf]  ;;  %v1474_v57 = vor.u32 %v1690_v50, %v1473_v49  ;;  %v1401_v58 = vld [vmem:[#allocation5 + $0x280] sm:$0xf]  ;;  %v1672_v59 = vld [vmem:[#allocation5 + $0x284] sm:$0xf0] }
  0x37   :  { %911 = vmatpush.bf16.msrb.mxu1 %v1442_v3  ;;  %v1538_v61 = vor.u32 %v1706_v52, %v1537_v51  ;;  %v1688_v62 = vld [vmem:[#allocation5 + $0x304] sm:$0xf0]  ;;  %v1529_v63 = vld [vmem:[#allocation5 + $0x380] sm:$0xf]  ;;  %v1605_v1 = vld [vmem:[#allocation5 + $0x74] sm:$0xf]  ;;  %v1402_v8 = vor.u32 %v1672_v59, %v1401_v58 }
  0x38   :  { %924 = vmatpush.bf16.msrb.mxu2 %v1506_v4  ;;  %v1704_v0 = vld [vmem:[#allocation5 + $0x384] sm:$0xf0]  ;;  %v1139_v2 = vld [vmem:[#allocation5 + $0x78] sm:$0xf0]  ;;  %v1621_v3 = vld [vmem:[#allocation5 + $0xf4] sm:$0xf]  ;;  %v1338_v4 = vor.u32 %v1656_v55, %v1337_v54  ;;  %v1466_v9 = vor.u32 %v1688_v62, %v1465_v60 }
  0x39   :  { %937 = vmatpush.bf16.msrb.mxu3 %v1570_v7  ;;  %v1203_v5 = vld [vmem:[#allocation5 + $0xf8] sm:$0xf0]  ;;  %v1637_v6 = vld [vmem:[#allocation5 + $0x174] sm:$0xf]  ;;  %v1530_v12 = vor.u32 %v1704_v0, %v1529_v63  ;;  %v1603_v16 = vld [vmem:[#allocation5 + $0x64] sm:$0xf] }
  0x3a   :  { %899 = vmatpush.bf16.msrb.mxu0 %v1370_v13  ;;  %v1267_v7 = vld [vmem:[#allocation5 + $0x178] sm:$0xf0]  ;;  %v1653_v10 = vld [vmem:[#allocation5 + $0x1f4] sm:$0xf]  ;;  %v1142_v13 = vor.u32 %v1605_v1, %v1139_v2  ;;  %v1131_v17 = vld [vmem:[#allocation5 + $0x68] sm:$0xf0] }
  0x3b   :  { %912 = vmatpush.bf16.msrb.mxu1 %v1434_v14  ;;  %v1331_v11 = vld [vmem:[#allocation5 + $0x1f8] sm:$0xf0]  ;;  %v1206_v14 = vor.u32 %v1621_v3, %v1203_v5  ;;  %v1619_v18 = vld [vmem:[#allocation5 + $0xe4] sm:$0xf]  ;;  %v1195_v20 = vld [vmem:[#allocation5 + $0xe8] sm:$0xf0] }
  0x3c   :  { %925 = vmatpush.bf16.msrb.mxu2 %v1498_v15  ;;  %v1270_v15 = vor.u32 %v1637_v6, %v1267_v7  ;;  %v1635_v21 = vld [vmem:[#allocation5 + $0x164] sm:$0xf]  ;;  %v1259_v22 = vld [vmem:[#allocation5 + $0x168] sm:$0xf0]  ;;  %v1198_v33 = vor.u32 %v1619_v18, %v1195_v20  ;;  %v1123_v36 = vld [vmem:[#allocation5 + $0x58] sm:$0xf0] }
  0x3d   :  { %938 = vmatpush.bf16.msrb.mxu3 %v1562_v19  ;;  %v1334_v19 = vor.u32 %v1653_v10, %v1331_v11  ;;  %v1651_v23 = vld [vmem:[#allocation5 + $0x1e4] sm:$0xf]  ;;  %v1323_v24 = vld [vmem:[#allocation5 + $0x1e8] sm:$0xf0]  ;;  %v1617_v37 = vld [vmem:[#allocation5 + $0xd4] sm:$0xf] }
  0x3e   :  { %900 = vmatpush.bf16.msrb.mxu0 %v1362_v26  ;;  %v1827_v25 = vld [vmem:[#allocation1 + $0x36] sm:$0xff]  ;;  %v1134_v26 = vor.u32 %v1603_v16, %v1131_v17  ;;  %v1831_v32 = vld [vmem:[#allocation1 + $0x3f] sm:$0xff]  ;;  %v1833_v38 = vld [vmem:[#allocation1 + $0x2d] sm:$0xff]  ;;  %v1326_v39 = vor.u32 %v1651_v23, %v1323_v24 }
  0x3f   :  { %913 = vmatpush.bf16.msrb.mxu1 %v1426_v30  ;;  %v1601_v30 = vld [vmem:[#allocation5 + $0x54] sm:$0xf]  ;;  %v1187_v40 = vld [vmem:[#allocation5 + $0xd8] sm:$0xf0]  ;;  %v1599_v48 = vld [vmem:[#allocation5 + $0x44] sm:$0xf] }
  0x40   :  { %926 = vmatpush.bf16.msrb.mxu2 %v1490_v31  ;;  %v1829_v31 = vld [vmem:[#allocation1 + $0x24] sm:$0xff]  ;;  %v1315_v44 = vld [vmem:[#allocation5 + $0x1d8] sm:$0xf0]  ;;  %v1126_v45 = vor.u32 %v1601_v30, %v1123_v36  ;;  %v1190_v46 = vor.u32 %v1617_v37, %v1187_v40  ;;  %v1115_v49 = vld [vmem:[#allocation5 + $0x48] sm:$0xf0] }
  0x41   :  { %939 = vmatpush.bf16.msrb.mxu3 %v1554_v35  ;;  %v1262_v35 = vor.u32 %v1635_v21, %v1259_v22  ;;  %v1615_v50 = vld [vmem:[#allocation5 + $0xc4] sm:$0xf]  ;;  %v1179_v52 = vld [vmem:[#allocation5 + $0xc8] sm:$0xf0]  ;;  %v1597_v60 = vld [vmem:[#allocation5 + $0x34] sm:$0xf] }
  0x42   :  { %901 = vmatpush.bf16.msrb.mxu0 %v1354_v41  ;;  %v1633_v41 = vld [vmem:[#allocation5 + $0x154] sm:$0xf]  ;;  %v1243_v54 = vld [vmem:[#allocation5 + $0x148] sm:$0xf0]  ;;  %v1647_v55 = vld [vmem:[#allocation5 + $0x1c4] sm:$0xf]  ;;  %v1182_v58 = vor.u32 %v1615_v50, %v1179_v52 }
  0x43   :  { %914 = vmatpush.bf16.msrb.mxu1 %v1418_v42  ;;  %v1251_v42 = vld [vmem:[#allocation5 + $0x158] sm:$0xf0]  ;;  %v1613_v62 = vld [vmem:[#allocation5 + $0xb4] sm:$0xf]  ;;  %v1611_v10 = vld [vmem:[#allocation5 + $0xa4] sm:$0xf] }
  0x44   :  { %927 = vmatpush.bf16.msrb.mxu2 %v1482_v43  ;;  %v1649_v43 = vld [vmem:[#allocation5 + $0x1d4] sm:$0xf]  ;;  %v1171_v0 = vld [vmem:[#allocation5 + $0xb8] sm:$0xf0]  ;;  %v1291_v16 = vld [vmem:[#allocation5 + $0x1a8] sm:$0xf0] }
  0x45   :  { %940 = vmatpush.bf16.msrb.mxu3 %v1546_v47  ;;  %v1254_v47 = vor.u32 %v1633_v41, %v1251_v42  ;;  %v1318_v51 = vor.u32 %v1649_v43, %v1315_v44  ;;  %v1629_v1 = vld [vmem:[#allocation5 + $0x134] sm:$0xf]  ;;  %v1235_v2 = vld [vmem:[#allocation5 + $0x138] sm:$0xf0]  ;;  %v1174_v6 = vor.u32 %v1613_v62, %v1171_v0  ;;  %v1591_v37 = vld [vmem:[#allocation5 + $0x4] sm:$0xf] }
  0x46   :  { %902 = vmatpush.bf16.msrb.mxu0 %v1346_v53  ;;  %v1631_v53 = vld [vmem:[#allocation5 + $0x144] sm:$0xf]  ;;  %v1645_v3 = vld [vmem:[#allocation5 + $0x1b4] sm:$0xf]  ;;  %v1238_v7 = vor.u32 %v1629_v1, %v1235_v2  ;;  %v1091_v21 = vld [vmem:[#allocation5 + $0x18] sm:$0xf0] }
  0x47   :  { %915 = vmatpush.bf16.msrb.mxu1 %v1410_v56  ;;  %v1307_v56 = vld [vmem:[#allocation5 + $0x1c8] sm:$0xf0]  ;;  %v1246_v59 = vor.u32 %v1631_v53, %v1243_v54  ;;  %v1593_v20 = vld [vmem:[#allocation5 + $0x14] sm:$0xf]  ;;  %v1155_v24 = vld [vmem:[#allocation5 + $0x98] sm:$0xf0] }
  0x48   :  { %928 = vmatpush.bf16.msrb.mxu2 %v1474_v57  ;;  %v1118_v57 = vor.u32 %v1599_v48, %v1115_v49  ;;  %v1310_v63 = vor.u32 %v1647_v55, %v1307_v56  ;;  %v1609_v22 = vld [vmem:[#allocation5 + $0x94] sm:$0xf]  ;;  %v1219_v30 = vld [vmem:[#allocation5 + $0x118] sm:$0xf0]  ;;  %v1094_v36 = vor.u32 %v1593_v20, %v1091_v21  ;;  %v1607_v42 = vld [vmem:[#allocation5 + $0x84] sm:$0xf] }
  0x49   :  { %941 = vmatpush.bf16.msrb.mxu3 %v1538_v61  ;;  %v1107_v61 = vld [vmem:[#allocation5 + $0x38] sm:$0xf0]  ;;  %v1158_v40 = vor.u32 %v1609_v22, %v1155_v24  ;;  %v1147_v43 = vld [vmem:[#allocation5 + $0x88] sm:$0xf0]  ;;  %v1623_v44 = vld [vmem:[#allocation5 + $0x104] sm:$0xf] }
  0x4a   :  { %903 = vmatpush.bf16.msrb.mxu0 %v1338_v4  ;;  %v1299_v4 = vld [vmem:[#allocation5 + $0x1b8] sm:$0xf0]  ;;  %v1110_v5 = vor.u32 %v1597_v60, %v1107_v61  ;;  %v1275_v48 = vld [vmem:[#allocation5 + $0x188] sm:$0xf0]  ;;  %v1669_v49 = vld [vmem:[#allocation5 + $0x274] sm:$0xf]  ;;  %v1150_v56 = vor.u32 %v1607_v42, %v1147_v43 }
  0x4b   :  { %916 = vmatpush.bf16.msrb.mxu1 %v1402_v8  ;;  %v1595_v8 = vld [vmem:[#allocation5 + $0x24] sm:$0xf]  ;;  %v1302_v11 = vor.u32 %v1645_v3, %v1299_v4  ;;  %v1395_v50 = vld [vmem:[#allocation5 + $0x278] sm:$0xf0]  ;;  %v1701_v54 = vld [vmem:[#allocation5 + $0x374] sm:$0xf] }
  0x4c   :  { %929 = vmatpush.bf16.msrb.mxu2 %v1466_v9  ;;  %v1099_v9 = vld [vmem:[#allocation5 + $0x28] sm:$0xf0]  ;;  %v1459_v53 = vld [vmem:[#allocation5 + $0x2f8] sm:$0xf0]  ;;  %v1398_v61 = vor.u32 %v1669_v49, %v1395_v50  ;;  %v1667_v0 = vld [vmem:[#allocation5 + $0x264] sm:$0xf] }
  0x4d   :  { %942 = vmatpush.bf16.msrb.mxu3 %v1530_v12  ;;  %904 = vmatmul.bf16.vlgmr.msrb.gmra.mxu0 %v1829_v31  ;;  %v1163_v12 = vld [vmem:[#allocation5 + $0xa8] sm:$0xf0]  ;;  %v1102_v17 = vor.u32 %v1595_v8, %v1099_v9  ;;  %v1523_v55 = vld [vmem:[#allocation5 + $0x378] sm:$0xf0]  ;;  %v1683_v2 = vld [vmem:[#allocation5 + $0x2e4] sm:$0xf] }
  0x4e   :  { %948 = vmatpush.bf16.msra.mxu0 %v1142_v13  ;;  %917 = vmatmul.bf16.vlgmr.msrb.gmra.mxu1 %v1833_v38  ;;  %v1627_v13 = vld [vmem:[#allocation5 + $0x124] sm:$0xf]  ;;  %v1166_v18 = vor.u32 %v1611_v10, %v1163_v12  ;;  %v1387_v1 = vld [vmem:[#allocation5 + $0x268] sm:$0xf0]  ;;  %v1665_v12 = vld [vmem:[#allocation5 + $0x254] sm:$0xf] }
  0x4f   :  { %961 = vmatpush.bf16.msra.mxu1 %v1206_v14  ;;  %930 = vmatmul.bf16.vlgmr.msrb.gmra.mxu2 %v1827_v25  ;;  %v1227_v14 = vld [vmem:[#allocation5 + $0x128] sm:$0xf0]  ;;  %v1390_v9 = vor.u32 %v1667_v0, %v1387_v1  ;;  %v1571_v20 = vld [vmem:[#allocation5 + $0x3d8] sm:$0xf0]  ;;  %v1663_v24 = vld [vmem:[#allocation5 + $0x244] sm:$0xf] }
  0x50   :  { %974 = vmatpush.bf16.msra.mxu2 %v1270_v15  ;;  %943 = vmatmul.bf16.vlgmr.msrb.gmra.mxu3 %v1831_v32  ;;  %v1643_v15 = vld [vmem:[#allocation5 + $0x1a4] sm:$0xf]  ;;  %v1451_v4 = vld [vmem:[#allocation5 + $0x2e8] sm:$0xf0]  ;;  %v1677_v42 = vld [vmem:[#allocation5 + $0x2b4] sm:$0xf] }
  0x51   :  { %987 = vmatpush.bf16.msra.mxu3 %v1334_v19  ;;  %v1230_v19 = vor.u32 %v1627_v13, %v1227_v14  ;;  %v1294_v23 = vor.u32 %v1643_v15, %v1291_v16  ;;  %v1579_v8 = vld [vmem:[#allocation5 + $0x3e8] sm:$0xf0]  ;;  %v1454_v10 = vor.u32 %v1683_v2, %v1451_v4  ;;  %v1379_v13 = vld [vmem:[#allocation5 + $0x258] sm:$0xf0]  ;;  %v1681_v14 = vld [vmem:[#allocation5 + $0x2d4] sm:$0xf] }
  0x52   :  { %949 = vmatpush.bf16.msra.mxu0 %v1134_v26  ;;  %v1625_v26 = vld [vmem:[#allocation5 + $0x114] sm:$0xf]  ;;  %v1443_v16 = vld [vmem:[#allocation5 + $0x2d8] sm:$0xf0]  ;;  %v1382_v21 = vor.u32 %v1665_v12, %v1379_v13  ;;  %v1655_v12 = vld [vmem:[#allocation5 + $0x204] sm:$0xf] }
  0x53   :  { %962 = vmatpush.bf16.msra.mxu1 %v1198_v33  ;;  %v1641_v33 = vld [vmem:[#allocation5 + $0x194] sm:$0xf]  ;;  %v1222_v41 = vor.u32 %v1625_v26, %v1219_v30  ;;  %v1446_v22 = vor.u32 %v1681_v14, %v1443_v16  ;;  %v1371_v26 = vld [vmem:[#allocation5 + $0x248] sm:$0xf0]  ;;  %v1347_v1 = vld [vmem:[#allocation5 + $0x218] sm:$0xf0] }
  0x54   :  { %975 = vmatpush.bf16.msra.mxu2 %v1262_v35  ;;  %v1283_v35 = vld [vmem:[#allocation5 + $0x198] sm:$0xf0]  ;;  %v1657_v0 = vld [vmem:[#allocation5 + $0x214] sm:$0xf]  ;;  %v1339_v13 = vld [vmem:[#allocation5 + $0x208] sm:$0xf0] }
  0x55   :  { %988 = vmatpush.bf16.msra.mxu3 %v1326_v39  ;;  %v1083_v39 = vld [vmem:[#allocation5 + $0x8] sm:$0xf0]  ;;  %v1673_v2 = vld [vmem:[#allocation5 + $0x294] sm:$0xf]  ;;  %v1411_v4 = vld [vmem:[#allocation5 + $0x298] sm:$0xf0] }
  0x56   :  { %950 = vmatpush.bf16.msra.mxu0 %v1126_v45  ;;  %v1286_v45 = vor.u32 %v1641_v33, %v1283_v35  ;;  %v1086_v52 = vor.u32 %v1591_v37, %v1083_v39  ;;  %v1435_v33 = vld [vmem:[#allocation5 + $0x2c8] sm:$0xf0]  ;;  %v1695_v35 = vld [vmem:[#allocation5 + $0x344] sm:$0xf] }
  0x57   :  { %963 = vmatpush.bf16.msra.mxu1 %v1190_v46  ;;  %v1211_v46 = vld [vmem:[#allocation5 + $0x108] sm:$0xf0]  ;;  %v1711_v37 = vld [vmem:[#allocation5 + $0x3c4] sm:$0xf] }
  0x58   :  { %976 = vmatpush.bf16.msra.mxu2 %v1254_v47  ;;  %v1639_v47 = vld [vmem:[#allocation5 + $0x184] sm:$0xf]  ;;  %v1403_v16 = vld [vmem:[#allocation5 + $0x288] sm:$0xf0] }
  0x59   :  { %989 = vmatpush.bf16.msra.mxu3 %v1318_v51  ;;  %v1685_v51 = vld [vmem:[#allocation5 + $0x2f4] sm:$0xf]  ;;  %v1278_v60 = vor.u32 %v1639_v47, %v1275_v48  ;;  %v1555_v48 = vld [vmem:[#allocation5 + $0x3b8] sm:$0xf0]  ;;  %v1671_v14 = vld [vmem:[#allocation5 + $0x284] sm:$0xf] }
  0x5a   :  { %951 = vmatpush.bf16.msra.mxu0 %v1118_v57  ;;  %v1214_v57 = vor.u32 %v1623_v44, %v1211_v46  ;;  %v1462_v62 = vor.u32 %v1685_v51, %v1459_v53  ;;  %v1427_v44 = vld [vmem:[#allocation5 + $0x2b8] sm:$0xf0]  ;;  %v1709_v47 = vld [vmem:[#allocation5 + $0x3b4] sm:$0xf]  ;;  %v1355_v53 = vld [vmem:[#allocation5 + $0x228] sm:$0xf0] }
  0x5b   :  { %964 = vmatpush.bf16.msra.mxu1 %v1182_v58  ;;  %v1717_v58 = vld [vmem:[#allocation5 + $0x3f4] sm:$0xf]  ;;  %v1491_v46 = vld [vmem:[#allocation5 + $0x338] sm:$0xf0]  ;;  %v1430_v50 = vor.u32 %v1677_v42, %v1427_v44 }
  0x5c   :  { %977 = vmatpush.bf16.msra.mxu2 %v1246_v59  ;;  %v1587_v59 = vld [vmem:[#allocation5 + $0x3f8] sm:$0xf0] }
  0x5d   :  { %990 = vmatpush.bf16.msra.mxu3 %v1310_v63  ;;  %v1526_v63 = vor.u32 %v1701_v54, %v1523_v55  ;;  %v1590_v3 = vor.u32 %v1717_v58, %v1587_v59  ;;  %v1675_v54 = vld [vmem:[#allocation5 + $0x2a4] sm:$0xf]  ;;  %v1558_v55 = vor.u32 %v1709_v47, %v1555_v48  ;;  %v1483_v58 = vld [vmem:[#allocation5 + $0x328] sm:$0xf0] }
  0x5e   :  { %952 = vmatpush.bf16.msra.mxu0 %v1110_v5  ;;  %v1699_v5 = vld [vmem:[#allocation5 + $0x364] sm:$0xf] }
  0x5f   :  { %965 = vmatpush.bf16.msra.mxu1 %v1174_v6  ;;  %v1515_v6 = vld [vmem:[#allocation5 + $0x368] sm:$0xf0]  ;;  %v1707_v59 = vld [vmem:[#allocation5 + $0x3a4] sm:$0xf] }
  0x60   :  { %978 = vmatpush.bf16.msra.mxu2 %v1238_v7  ;;  %v1715_v7 = vld [vmem:[#allocation5 + $0x3e4] sm:$0xf] }
  0x61   :  { %991 = vmatpush.bf16.msra.mxu3 %v1302_v11  ;;  %v1518_v11 = vor.u32 %v1699_v5, %v1515_v6  ;;  %v1582_v15 = vor.u32 %v1715_v7, %v1579_v8  ;;  %v1689_v5 = vld [vmem:[#allocation5 + $0x314] sm:$0xf]  ;;  %v1475_v6 = vld [vmem:[#allocation5 + $0x318] sm:$0xf0] }
  0x62   :  { %953 = vmatpush.bf16.msra.mxu0 %v1102_v17  ;;  %v1697_v17 = vld [vmem:[#allocation5 + $0x354] sm:$0xf]  ;;  %v1539_v8 = vld [vmem:[#allocation5 + $0x398] sm:$0xf0] }
  0x63   :  { %966 = vmatpush.bf16.msra.mxu1 %v1166_v18  ;;  %v1507_v18 = vld [vmem:[#allocation5 + $0x358] sm:$0xf0]  ;;  %v1705_v7 = vld [vmem:[#allocation5 + $0x394] sm:$0xf] }
  0x64   :  { %979 = vmatpush.bf16.msra.mxu2 %v1230_v19  ;;  %v1713_v19 = vld [vmem:[#allocation5 + $0x3d4] sm:$0xf] }
  0x65   :  { %992 = vmatpush.bf16.msra.mxu3 %v1294_v23  ;;  %v1510_v23 = vor.u32 %v1697_v17, %v1507_v18  ;;  %v1574_v30 = vor.u32 %v1713_v19, %v1571_v20  ;;  %v1687_v17 = vld [vmem:[#allocation5 + $0x304] sm:$0xf]  ;;  %v1467_v18 = vld [vmem:[#allocation5 + $0x308] sm:$0xf0] }
  0x66   :  { %954 = vmatpush.bf16.msra.mxu0 %v1094_v36  ;;  %v1499_v36 = vld [vmem:[#allocation5 + $0x348] sm:$0xf0]  ;;  %v1703_v19 = vld [vmem:[#allocation5 + $0x384] sm:$0xf] }
  0x67   :  { %967 = vmatpush.bf16.msra.mxu1 %v1158_v40  ;;  %v1661_v40 = vld [vmem:[#allocation5 + $0x234] sm:$0xf]  ;;  %v1531_v20 = vld [vmem:[#allocation5 + $0x388] sm:$0xf0] }
  0x68   :  { %980 = vmatpush.bf16.msra.mxu2 %v1222_v41  ;;  %v1363_v41 = vld [vmem:[#allocation5 + $0x238] sm:$0xf0] }
  0x69   :  { %993 = vmatpush.bf16.msra.mxu3 %v1286_v45  ;;  %v1693_v45 = vld [vmem:[#allocation5 + $0x334] sm:$0xf]  ;;  %v1366_v49 = vor.u32 %v1661_v40, %v1363_v41 }
  0x6a   :  { %955 = vmatpush.bf16.msra.mxu0 %v1086_v52  ;;  %v1494_v51 = vor.u32 %v1693_v45, %v1491_v46  ;;  %v1659_v52 = vld [vmem:[#allocation5 + $0x224] sm:$0xf] }
  0x6b   :  { %968 = vmatpush.bf16.msra.mxu1 %v1150_v56  ;;  %v1419_v56 = vld [vmem:[#allocation5 + $0x2a8] sm:$0xf0] }
  0x6c   :  { %981 = vmatpush.bf16.msra.mxu2 %v1214_v57  ;;  %v1691_v57 = vld [vmem:[#allocation5 + $0x324] sm:$0xf] }
  0x6d   :  { %994 = vmatpush.bf16.msra.mxu3 %v1278_v60  ;;  %956 = vmatmul.bf16.vlgmr.msra.gmra.mxu0 %v1817_v28  ;;  %v1563_v28 = vld [vmem:[#allocation5 + $0x3c8] sm:$0xf0] }
  0x6e   :  { %1000 = vmatpush.bf16.msrb.mxu0 %v1398_v61  ;;  %969 = vmatmul.bf16.vlgmr.msra.gmra.mxu1 %v1821_v34  ;;  %v1502_v34 = vor.u32 %v1695_v35, %v1499_v36  ;;  %v1566_v43 = vor.u32 %v1711_v37, %v1563_v28  ;;  %v1547_v60 = vld [vmem:[#allocation5 + $0x3a8] sm:$0xf0]  ;;  %v1358_v61 = vor.u32 %v1659_v52, %v1355_v53 }
  0x6f   :  { %1013 = vmatpush.bf16.msrb.mxu1 %v1462_v62  ;;  %982 = vmatmul.bf16.vlgmr.msra.gmra.mxu2 %v1815_v27  ;;  %v1679_v27 = vld [vmem:[#allocation5 + $0x2c4] sm:$0xf]  ;;  %v1422_v62 = vor.u32 %v1675_v54, %v1419_v56 }
  0x70   :  { %1026 = vmatpush.bf16.msrb.mxu2 %v1526_v63  ;;  %995 = vmatmul.bf16.vlgmr.msra.gmra.mxu3 %v1819_v29  ;;  %v1374_v29 = vor.u32 %v1663_v24, %v1371_v26  ;;  %v1438_v39 = vor.u32 %v1679_v27, %v1435_v33  ;;  %v1486_v63 = vor.u32 %v1691_v57, %v1483_v58  ;;  %v180_v26 = vld [vmem:[%s1861_s2] sm:$0x3] }
  0x71   :  { %1039 = vmatpush.bf16.msrb.mxu3 %v1590_v3  ;;  %v1550_v3 = vor.u32 %v1707_v59, %v1547_v60  ;;  %v1534_v24 = vor.u32 %v1703_v19, %v1531_v20  ;;  %v182_v27 = vperm.slane %v180_v26, 0  ;;  %v183_v53 = vperm.slane %v180_v26, 1 }
  0x72   :  { %1001 = vmatpush.bf16.msrb.mxu0 %v1390_v9  ;;  %v1350_v9 = vor.u32 %v1657_v0, %v1347_v1 }
  0x73   :  { %1014 = vmatpush.bf16.msrb.mxu1 %v1454_v10  ;;  %v1414_v10 = vor.u32 %v1673_v2, %v1411_v4 }
  0x74   :  { %1027 = vmatpush.bf16.msrb.mxu2 %v1518_v11  ;;  %v1478_v11 = vor.u32 %v1689_v5, %v1475_v6 }
  0x75   :  { %1040 = vmatpush.bf16.msrb.mxu3 %v1582_v15  ;;  %v1542_v15 = vor.u32 %v1705_v7, %v1539_v8 }
  0x76   :  { %1002 = vmatpush.bf16.msrb.mxu0 %v1382_v21  ;;  %v1342_v21 = vor.u32 %v1655_v12, %v1339_v13 }
  0x77   :  { %1015 = vmatpush.bf16.msrb.mxu1 %v1446_v22  ;;  %v1406_v22 = vor.u32 %v1671_v14, %v1403_v16 }
  0x78   :  { %1028 = vmatpush.bf16.msrb.mxu2 %v1510_v23  ;;  %v1470_v23 = vor.u32 %v1687_v17, %v1467_v18 }
  0x79   :  { %1041 = vmatpush.bf16.msrb.mxu3 %v1574_v30 }
  0x7a   :  { %1003 = vmatpush.bf16.msrb.mxu0 %v1374_v29 }
  0x7b   :  { %1016 = vmatpush.bf16.msrb.mxu1 %v1438_v39 }
  0x7c   :  { %1029 = vmatpush.bf16.msrb.mxu2 %v1502_v34 }
  0x7d   :  { %1042 = vmatpush.bf16.msrb.mxu3 %v1566_v43 }
  0x7e   :  { %1004 = vmatpush.bf16.msrb.mxu0 %v1366_v49 }
  0x7f   :  { %1017 = vmatpush.bf16.msrb.mxu1 %v1430_v50 }
  0x80   :  { %1030 = vmatpush.bf16.msrb.mxu2 %v1494_v51 }
  0x81   :  { %1043 = vmatpush.bf16.msrb.mxu3 %v1558_v55 }
  0x82   :  { %1005 = vmatpush.bf16.msrb.mxu0 %v1358_v61 }
  0x83   :  { %1018 = vmatpush.bf16.msrb.mxu1 %v1422_v62 }
  0x84   :  { %1031 = vmatpush.bf16.msrb.mxu2 %v1486_v63 }
  0x85   :  { %1044 = vmatpush.bf16.msrb.mxu3 %v1550_v3  ;;  %v1054_v3 = vld [vmem:[%s1862_s3] sm:$0x3] }
  0x86   :  { %1006 = vmatpush.bf16.msrb.mxu0 %v1350_v9  ;;  %v1057_v13 = vperm.slane %v1054_v3, 1 }
  0x87   :  { %1019 = vmatpush.bf16.msrb.mxu1 %v1414_v10  ;;  %v1056_v10 = vperm.slane %v1054_v3, 0 }
  0x88   :  { %1032 = vmatpush.bf16.msrb.mxu2 %v1478_v11 }
  0x89   :  { %1045 = vmatpush.bf16.msrb.mxu3 %v1542_v15 }
  0x8a   :  { %1007 = vmatpush.bf16.msrb.mxu0 %v1342_v21 }
  0x8b   :  { %1020 = vmatpush.bf16.msrb.mxu1 %v1406_v22  ;;  %v1069_v22 = vstv %s1863_s4 }
  0x8c   :  { %1033 = vmatpush.bf16.msrb.mxu2 %v1470_v23 }
  0x8d   :  { %1046 = vmatpush.bf16.msrb.mxu3 %v1534_v24  ;;  %1008 = vmatmul.bf16.vlgmr.msrb.gmra.mxu0 %v1829_v31 }
  0x8e   :  { %1021 = vmatmul.bf16.vlgmr.msrb.gmra.mxu1 %v1833_v38 }
  0x8f   :  { %1034 = vmatmul.bf16.vlgmr.msrb.gmra.mxu2 %v1827_v25 }
  0x90   :  { %1047 = vmatmul.bf16.vlgmr.msrb.gmra.mxu3 %v1831_v32 }
  0xb1   :  { %v853_v30 = vpop.f32.mrf.mxu0 }
  0xb2   :  { %v854_v33 = vadd.f32 %v853_v30, %v182_v27  ;;  %v866_v35 = vpop.f32.mrf.mxu1 }
  0xb4   :  { %v867_v36 = vadd.f32 %v866_v35, %v854_v33 }
  0xb6   :  { %v879_v37 = vpop.f32.mrf.mxu2 }
  0xb7   :  { %v880_v28 = vadd.f32 %v879_v37, %v867_v36 }
  0xb9   :  { %v892_v29 = vpop.f32.mrf.mxu3  ;;  %v855_v31 = vpop.f32.mrf.mxu0 }
  0xba   :  { %v893_v39 = vadd.f32 %v892_v29, %v880_v28  ;;  %v868_v34 = vpop.f32.mrf.mxu1 }
  0xbe   :  { %v881_v38 = vpop.f32.mrf.mxu2 }
  0xc1   :  { %v894_v40 = vpop.f32.mrf.mxu3 }
  0xca   :  { %v905_v25 = vpop.f32.mrf.mxu0 }
  0xcb   :  { %v918_v41 = vpop.f32.mrf.mxu1  ;;  %v906_v57 = vadd.f32 %v905_v25, %v893_v39 }
  0xcd   :  { %v919_v59 = vadd.f32 %v918_v41, %v906_v57 }
  0xd2   :  { %v931_v32 = vpop.f32.mrf.mxu2  ;;  %v907_v43 = vpop.f32.mrf.mxu0 }
  0xd3   :  { %v944_v42 = vpop.f32.mrf.mxu3  ;;  %v920_v44 = vpop.f32.mrf.mxu1  ;;  %v932_v61 = vadd.f32 %v931_v32, %v919_v59 }
  0xd5   :  { %v945_v2 = vadd.f32 %v944_v42, %v932_v61 }
  0xd7   :  { %v1052_v6 = vmax.f32 %v945_v2, 0.0 }
  0xd9   :  { %v1060_v15 = vmul.f32 %v1056_v10, %v1052_v6 }
  0xda   :  { %v933_v45 = vpop.f32.mrf.mxu2 }
  0xdb   :  { %v946_v46 = vpop.f32.mrf.mxu3  ;;  %v1063_v19 = vsel %vm1062_vm0, %v1060_v15, 0.0 }
  0xea   :  { %v957_v47 = vpop.f32.mrf.mxu0 }
  0xeb   :  { %v970_v48 = vpop.f32.mrf.mxu1  ;;  %v958_v56 = vadd.f32 %v957_v47, %v183_v53 }
  0xed   :  { %v971_v58 = vadd.f32 %v970_v48, %v958_v56 }
  0xf2   :  { %v983_v49 = vpop.f32.mrf.mxu2  ;;  %v959_v51 = vpop.f32.mrf.mxu0 }
  0xf3   :  { %v996_v50 = vpop.f32.mrf.mxu3  ;;  %v972_v52 = vpop.f32.mrf.mxu1  ;;  %v984_v60 = vadd.f32 %v983_v49, %v971_v58 }
  0xf5   :  { %v997_v62 = vadd.f32 %v996_v50, %v984_v60 }
  0xfa   :  { %v985_v54 = vpop.f32.mrf.mxu2 }
  0xfb   :  { %v998_v55 = vpop.f32.mrf.mxu3 }
 0x10a   :  { %v1009_v63 = vpop.f32.mrf.mxu0 }
 0x10b   :  { %v1022_v0 = vpop.f32.mrf.mxu1  ;;  %v1010_v1 = vadd.f32 %v1009_v63, %v997_v62 }
 0x10d   :  { %v1023_v4 = vadd.f32 %v1022_v0, %v1010_v1 }
 0x112   :  { %v1035_v5 = vpop.f32.mrf.mxu2  ;;  %v1011_v9 = vpop.f32.mrf.mxu0 }
 0x113   :  { %v1036_v7 = vadd.f32 %v1035_v5, %v1023_v4  ;;  %v1048_v8 = vpop.f32.mrf.mxu3  ;;  %v1024_v11 = vpop.f32.mrf.mxu1 }
 0x115   :  { %v1049_v12 = vadd.f32 %v1048_v8, %v1036_v7 }
 0x117   :  { %v1053_v14 = vmax.f32 %v1049_v12, 0.0 }
 0x119   :  { %v1061_v16 = vmul.f32 %v1057_v13, %v1053_v14 }
 0x11a   :  { %v1037_v17 = vpop.f32.mrf.mxu2 }
 0x11b   :  { %v1050_v18 = vpop.f32.mrf.mxu3  ;;  %v1064_v20 = vsel %vm1062_vm0, %v1061_v16, 0.0 }
 0x11c   :  { %v1065_v21 = vadd.f32 %v1064_v20, %v1063_v19 }
 0x11e   :  { %1066 = vadd.xlane.f32.xlu0 %v1065_v21 }
 0x191   :  { %v1067_v23 = vpop.xlane.xlu0 %1066 }
 0x192   :  { %v1070_v24 = vadd.f32 %v1069_v22, %v1067_v23 }
 0x194   :  { %1072 = vst.msk [vmem:[%s1864_s5] sm:$0x3] %vm1071_vm1, %v1070_v24 }
 0x195   :  { %1077 = vsyncpa [#allocation4], 1 }
 0x196   :  { %1078 = vsyncpa [#allocation6], 1 }

</bundles_post_ra>
